<compile_context>
chip_gen: v7x
topology: tpu7x:2x2x1
jax: 0.10.0
libtpu: 0.0.40
codegen_flags: <defaults>
</compile_context>

<pallas_src>
import functools

import jax
import jax.numpy as jnp
import numpy as np
from jax.experimental import pallas as pl
from jax.experimental.pallas import tpu as pltpu

LANE = 128
SUBLANE = 8
# Below 2*MIN_SPLIT_TB padded rows, run a single grid step instead of splitting:
# per-step overhead + MXU fill/drain dominates tiny-M matmuls.
MIN_SPLIT_TB = 256


def _round_up(x: int, m: int) -> int:
    return ((x + m - 1) // m) * m


def _cdiv(a: int, b: int) -> int:
    return -(-a // b)


# ---------------------------------------------------------------------------
# Kernel. n_layers is static; the kernel holds n_layers-1 explicit hidden blocks
# (the first hidden block was folded with the input Linear offline), plus one
# merged (dim_y, lw_pad + ds_pad) matmul covering both K=dim_y contractions.
# ---------------------------------------------------------------------------
def _make_ddmd_kernel(n_layers: int, lw_pad: int):
    n_hidden = n_layers - 1  # remaining [Linear -> ReLU6] blocks inside the kernel

    def kernel(*refs):
        it = iter(refs)
        y_ref = next(it)                                    # (TB, dim_y)
        wcomb_ref, bcomb_ref = next(it), next(it)           # (dim_y, lw_pad+ds_pad)
        hidden = [(next(it), next(it)) for _ in range(n_hidden)]
        wof_ref, bof_ref = next(it), next(it)               # folded out-linear @ kT_bot
        out_ref = next(it)                                  # (TB, ds_pad)

        y = y_ref[...]

        # One lane-dense K=dim_y pass:  t = y @ [W1' | kT_top] + [b1' | 0]
        t = jnp.dot(y, wcomb_ref[...], preferred_element_type=jnp.float32) + bcomb_ref[...]
        # Split at the 128-lane boundary (tile-aligned => free).
        x = jnp.clip(t[:, :lw_pad], 0.0, 6.0)               # ReLU6 of folded first layer
        acc = t[:, lw_pad:]                                 # y @ kT_top (zero-bias lanes)

        # Remaining hidden [Linear -> ReLU6] blocks. Padded lanes stay 0 (ReLU6(0)=0).
        for w_ref, b_ref in hidden:
            x = jnp.dot(x, w_ref[...], preferred_element_type=jnp.float32) + b_ref[...]
            x = jnp.clip(x, 0.0, 6.0)

        # out = y @ kT_top + x @ (W_out @ kT_bot) + (b_out @ kT_bot)
        out = acc + jnp.dot(x, wof_ref[...], preferred_element_type=jnp.float32)
        out_ref[...] = out + bof_ref[...]

    return kernel


# ---------------------------------------------------------------------------
# Offline weight preprocessing: fold activation-free linears, merge the two
# K=dim_y matmuls, zero-pad lanes. Run once; reused by every forward call.
# ---------------------------------------------------------------------------
def fold_and_pad_params(params, *, n_layers: int, dim_y: int, lane: int = LANE):
    assert n_layers >= 1, "folded kernel path assumes at least one hidden block"
    it = iter(params)
    w_in, b_in = next(it), next(it)                      # (dim_y, LW), (1, LW)
    hidden = [(next(it), next(it)) for _ in range(n_layers)]
    w_out, b_out = next(it), next(it)                    # (LW, DS-dim_y), (1, DS-dim_y)
    kT = next(it)                                        # (DS, DS), pre-transposed Koopman

    dim_state = kT.shape[1]
    kT_top = kT[:dim_y, :]                               # (dim_y, DS)
    kT_bot = kT[dim_y:, :]                               # (DS-dim_y, DS)

    # Fold input Linear into the first hidden Linear (no activation between them).
    w_h0, b_h0 = hidden[0]
    w1 = w_in @ w_h0                                     # (dim_y, LW)
    b1 = b_in @ w_h0 + b_h0                              # (1, LW)

    # Fold Feedforward output Linear into the bottom rows of the Koopman matrix.
    wof = w_out @ kT_bot                                 # (LW, DS)
    bof = b_out @ kT_bot                                 # (1, DS)

    lw = w1.shape[1]
    lw_p = _round_up(lw, lane)
    ds_p = _round_up(dim_state, lane)

    def pad2(a, rows, cols):
        return jnp.pad(a, ((0, rows - a.shape[0]), (0, cols - a.shape[1])))

    # Merge the two small-K matmuls (y@W1' and y@kT_top) into one lane-dense matrix.
    wcomb = jnp.concatenate([pad2(w1, dim_y, lw_p), pad2(kT_top, dim_y, ds_p)], axis=1)
    bcomb = jnp.concatenate(
        [pad2(b1, 1, lw_p), jnp.zeros((1, ds_p), dtype=w1.dtype)], axis=1
    )

    kp = [wcomb, bcomb]
    for (w, b) in hidden[1:]:
        kp += [pad2(w, lw_p, lw_p), pad2(b, 1, lw_p)]
    kp += [pad2(wof, lw_p, ds_p), pad2(bof, 1, ds_p)]
    return tuple(kp)


# ---------------------------------------------------------------------------
# Batch tiling: single grid step for small batches; even grid >= 2 with large
# tiles (<= block_batch) for big batches so v7x's two TensorCores both work.
# ---------------------------------------------------------------------------
def _choose_batch_tiling(batch: int, block_batch: int):
    bp = _round_up(batch, SUBLANE)
    tb_cap = max(SUBLANE, _round_up(block_batch, SUBLANE))
    if bp < 2 * MIN_SPLIT_TB:
        return bp, 1                                     # one step, whole (padded) batch
    n_steps = max(2, 2 * _cdiv(bp, 2 * tb_cap))          # even, each tile <= tb_cap
    tb = _round_up(_cdiv(bp, n_steps), SUBLANE)
    n_steps = _cdiv(bp, tb)
    if n_steps % 2:                                      # keep even for 2-TC sharding
        n_steps += 1
    return tb, n_steps


def _vmem_limit_bytes(kparams, tb: int, dim_y: int, lw_pad: int, ds_pad: int) -> int:
    itemsize = 4
    # Weights counted x2 even though Buffered(1) is requested (conservative).
    # NOTE: on v7x each TensorCore holds its own copy of the weights.
    weights = 2 * sum(int(np.prod(p.shape)) for p in kparams) * itemsize
    io = 2 * tb * dim_y * itemsize + 2 * tb * ds_pad * itemsize      # dbl-buffered tiles
    inter = tb * (lw_pad + ds_pad) * itemsize + tb * lw_pad * itemsize
    budget = weights + io + 2 * inter + (8 << 20)                    # + compiler headroom
    return min(budget, 48 << 20)


def _weight_spec(shape):
    # Constant index_map => single buffer is enough; halves weight VMEM residency.
    try:
        return pl.BlockSpec(shape, lambda i: (0, 0), pipeline_mode=pl.Buffered(1))
    except TypeError:  # older BlockSpec without pipeline_mode kwarg
        return pl.BlockSpec(shape, lambda i: (0, 0))


# ---------------------------------------------------------------------------
# Forward wrapper. Returns the LANE-PADDED output (Bp, ds_pad); the caller slices
# out[:batch, :dim_state] (kept out of the hot path to avoid an extra copy kernel).
# ---------------------------------------------------------------------------
@functools.partial(jax.jit, static_argnames=("n_layers", "block_batch"))
def ddmd_forward(y, kparams, *, n_layers: int, block_batch: int = 1024):
    batch, dim_y = y.shape
    ds_pad = kparams[-1].shape[1]                        # lane-padded state dim
    lw_pad = kparams[0].shape[1] - ds_pad                # lane-padded layer width

    tb, n_steps = _choose_batch_tiling(batch, block_batch)
    bp = tb * n_steps
    if bp != batch:
        y = jnp.pad(y, ((0, bp - batch), (0, 0)))

    weight_specs = [_weight_spec(p.shape) for p in kparams]

    out = pl.pallas_call(
        _make_ddmd_kernel(n_layers, lw_pad),
        out_shape=jax.ShapeDtypeStruct((bp, ds_pad), jnp.float32),
        grid=(n_steps,),
        in_specs=[pl.BlockSpec((tb, dim_y), lambda i: (i, 0))] + weight_specs,
        out_specs=pl.BlockSpec((tb, ds_pad), lambda i: (i, 0)),
        compiler_params=pltpu.CompilerParams(
            dimension_semantics=("parallel",),
            vmem_limit_bytes=_vmem_limit_bytes(kparams, tb, dim_y, lw_pad, ds_pad),
        ),
    )(y, *kparams)

    return out   # lane/row padded; slice [:batch, :dim_state] at the consumer


# ---------------------------------------------------------------------------
# Deterministic parameter initialization (synthetic, no checkpoint).
# Weights stored as (in_features, out_features), i.e. PyTorch weights pre-transposed.
# ---------------------------------------------------------------------------
def init_params(key, n_layers, layer_width, dim_y, dim_added_y):
    dim_state = dim_y + dim_added_y
    dim_ff_out = dim_added_y  # dim_in + dim_added = dim_y + (dim_added_y - dim_y)

    def linear(key, fan_in, fan_out, bias=True):
        kw, kb = jax.random.split(key)
        bound = 1.0 / np.sqrt(fan_in)
        w = jax.random.uniform(kw, (fan_in, fan_out), jnp.float32, -bound, bound)
        if bias:
            b = jax.random.uniform(kb, (1, fan_out), jnp.float32, -bound, bound)
            return w, b
        return (w,)

    keys = jax.random.split(key, n_layers + 3)
    params = []
    params.extend(linear(keys[0], dim_y, layer_width))                     # input Linear
    for i in range(n_layers):                                              # hidden Linears
        params.extend(linear(keys[1 + i], layer_width, layer_width))
    params.extend(linear(keys[n_layers + 1], layer_width, dim_ff_out))     # output Linear
    (kT,) = linear(keys[n_layers + 2], dim_state, dim_state, bias=False)   # Koopman (pre-T)
    params.append(kT)
    return tuple(params)


# ---------------------------------------------------------------------------
# Pure-JAX reference on the RAW (un-folded, un-padded) parameters.
# ---------------------------------------------------------------------------
def ddmd_reference(y, params, n_layers):
    it = iter(params)
    w_in, b_in = next(it), next(it)
    x = y @ w_in + b_in
    for _ in range(n_layers):
        w, b = next(it), next(it)
        x = jnp.clip(x @ w + b, 0.0, 6.0)
    w_out, b_out = next(it), next(it)
    y2 = x @ w_out + b_out
    sai = jnp.concatenate([y, y2], axis=1)
    kT = next(it)
    return sai @ kT


# ---------------------------------------------------------------------------
if __name__ == "__main__":
    # Small shapes consistent with the module.
    n_layers = 2
    layer_width = 32
    dim_y = 4
    dim_added_y = 12          # => dim_state = 16
    dim_state = dim_y + dim_added_y
    batch = 32

    key = jax.random.PRNGKey(0)
    k_params, k_y = jax.random.split(key)
    params = init_params(k_params, n_layers, layer_width, dim_y, dim_added_y)
    y = jax.random.normal(k_y, (batch, dim_y), jnp.float32)

    # One-time offline folding + lane padding of the weights.
    kparams = fold_and_pad_params(params, n_layers=n_layers, dim_y=dim_y)

    # Default block_batch (1024) => batch=32 runs as a single grid step.
    out = ddmd_forward(y, kparams, n_layers=n_layers)
    out = jax.block_until_ready(out)

    # Kernel returns the lane/row-padded buffer; padded rows/lanes are unused.
    assert out.shape == (_round_up(batch, SUBLANE), _round_up(dim_state, LANE)), out.shape
    out_np = np.asarray(out)[:batch, :dim_state]   # host-side slice (no extra XLA copy)

    ref = ddmd_reference(y, params, n_layers)
    # NOTE: offline folding reassociates fp math => agreement at ~1e-5, not bit-exact.
    np.testing.assert_allclose(out_np, np.asarray(ref), rtol=1e-4, atol=1e-5)

    print("KERNEL_OK")
</pallas_src>

<mosaic_0001>
module attributes {stable_mosaic.version = 11 : i64} {
  func.func @kernel(%arg0: i32, %arg1: memref<32x4xf32, #tpu.memory_space<vmem>>, %arg2: memref<4x256xf32, #tpu.memory_space<vmem>>, %arg3: memref<1x256xf32, #tpu.memory_space<vmem>>, %arg4: memref<128x128xf32, #tpu.memory_space<vmem>>, %arg5: memref<1x128xf32, #tpu.memory_space<vmem>>, %arg6: memref<128x128xf32, #tpu.memory_space<vmem>>, %arg7: memref<1x128xf32, #tpu.memory_space<vmem>>, %arg8: memref<32x128xf32, #tpu.memory_space<vmem>>) attributes {dimension_semantics = [#tpu.dimension_semantics<parallel>], iteration_bounds = array<i64: 1>, scalar_prefetch = 0 : i64, scratch_operands = 0 : i64, tpu.core_type = #tpu.core_type<tc>, window_params = [{transform_indices = @transform_0, window_bounds = array<i64: 32, 4>}, {pipeline_mode = #tpu.pipeline_mode<synchronous>, transform_indices = @transform_1, window_bounds = array<i64: 4, 256>}, {pipeline_mode = #tpu.pipeline_mode<synchronous>, transform_indices = @transform_2, window_bounds = array<i64: 1, 256>}, {pipeline_mode = #tpu.pipeline_mode<synchronous>, transform_indices = @transform_3, window_bounds = array<i64: 128, 128>}, {pipeline_mode = #tpu.pipeline_mode<synchronous>, transform_indices = @transform_4, window_bounds = array<i64: 1, 128>}, {pipeline_mode = #tpu.pipeline_mode<synchronous>, transform_indices = @transform_5, window_bounds = array<i64: 128, 128>}, {pipeline_mode = #tpu.pipeline_mode<synchronous>, transform_indices = @transform_6, window_bounds = array<i64: 1, 128>}, {transform_indices = @transform_7, window_bounds = array<i64: 32, 128>}]} {
    %c0 = arith.constant 0 : index
    %c0_0 = arith.constant 0 : index
    %0 = vector.load %arg1[%c0, %c0_0] : memref<32x4xf32, #tpu.memory_space<vmem>>, vector<32x4xf32>
    %c0_1 = arith.constant 0 : index
    %c0_2 = arith.constant 0 : index
    %1 = vector.load %arg2[%c0_1, %c0_2] : memref<4x256xf32, #tpu.memory_space<vmem>>, vector<4x256xf32>
    %cst = arith.constant dense<0.000000e+00> : vector<32x256xf32>
    %2 = tpu.matmul %0, %1, %cst {dimension_numbers = #tpu.dot_dimension_numbers<[1], [0], [0], [1], [0, 0, 1, 1], [], []>} : vector<32x4xf32>, vector<4x256xf32>, vector<32x256xf32> -> vector<32x256xf32>
    %c0_3 = arith.constant 0 : index
    %c0_4 = arith.constant 0 : index
    %3 = vector.load %arg3[%c0_3, %c0_4] : memref<1x256xf32, #tpu.memory_space<vmem>>, vector<1x256xf32>
    %4 = vector.broadcast %3 : vector<1x256xf32> to vector<32x256xf32>
    %5 = arith.addf %2, %4 : vector<32x256xf32>
    %6 = vector.extract_strided_slice %5 {offsets = [0, 0], sizes = [32, 128], strides = [1, 1]} : vector<32x256xf32> to vector<32x128xf32>
    %cst_5 = arith.constant 0.000000e+00 : f32
    %cst_6 = arith.constant 6.000000e+00 : f32
    %7 = vector.broadcast %cst_5 : f32 to vector<32x128xf32>
    %8 = arith.maximumf %7, %6 : vector<32x128xf32>
    %9 = vector.broadcast %cst_6 : f32 to vector<32x128xf32>
    %10 = arith.minimumf %9, %8 : vector<32x128xf32>
    %11 = vector.extract_strided_slice %5 {offsets = [0, 128], sizes = [32, 128], strides = [1, 1]} : vector<32x256xf32> to vector<32x128xf32>
    %c0_7 = arith.constant 0 : index
    %c0_8 = arith.constant 0 : index
    %12 = vector.load %arg4[%c0_7, %c0_8] : memref<128x128xf32, #tpu.memory_space<vmem>>, vector<128x128xf32>
    %cst_9 = arith.constant dense<0.000000e+00> : vector<32x128xf32>
    %13 = tpu.matmul %10, %12, %cst_9 {dimension_numbers = #tpu.dot_dimension_numbers<[1], [0], [0], [1], [0, 0, 1, 1], [], []>} : vector<32x128xf32>, vector<128x128xf32>, vector<32x128xf32> -> vector<32x128xf32>
    %c0_10 = arith.constant 0 : index
    %c0_11 = arith.constant 0 : index
    %14 = vector.load %arg5[%c0_10, %c0_11] : memref<1x128xf32, #tpu.memory_space<vmem>>, vector<1x128xf32>
    %15 = vector.broadcast %14 : vector<1x128xf32> to vector<32x128xf32>
    %16 = arith.addf %13, %15 : vector<32x128xf32>
    %cst_12 = arith.constant 0.000000e+00 : f32
    %cst_13 = arith.constant 6.000000e+00 : f32
    %17 = vector.broadcast %cst_12 : f32 to vector<32x128xf32>
    %18 = arith.maximumf %17, %16 : vector<32x128xf32>
    %19 = vector.broadcast %cst_13 : f32 to vector<32x128xf32>
    %20 = arith.minimumf %19, %18 : vector<32x128xf32>
    %c0_14 = arith.constant 0 : index
    %c0_15 = arith.constant 0 : index
    %21 = vector.load %arg6[%c0_14, %c0_15] : memref<128x128xf32, #tpu.memory_space<vmem>>, vector<128x128xf32>
    %cst_16 = arith.constant dense<0.000000e+00> : vector<32x128xf32>
    %22 = tpu.matmul %20, %21, %cst_16 {dimension_numbers = #tpu.dot_dimension_numbers<[1], [0], [0], [1], [0, 0, 1, 1], [], []>} : vector<32x128xf32>, vector<128x128xf32>, vector<32x128xf32> -> vector<32x128xf32>
    %23 = arith.addf %11, %22 : vector<32x128xf32>
    %c0_17 = arith.constant 0 : index
    %c0_18 = arith.constant 0 : index
    %24 = vector.load %arg7[%c0_17, %c0_18] : memref<1x128xf32, #tpu.memory_space<vmem>>, vector<1x128xf32>
    %25 = vector.broadcast %24 : vector<1x128xf32> to vector<32x128xf32>
    %26 = arith.addf %23, %25 : vector<32x128xf32>
    %c0_19 = arith.constant 0 : index
    %c0_20 = arith.constant 0 : index
    %27 = vector.load %arg8[%c0_19, %c0_20] : memref<32x128xf32, #tpu.memory_space<vmem>>, vector<32x128xf32>
    tpu.vector_store %arg8[%c0_19, %c0_20], %26 {strides = array<i32>} : memref<32x128xf32, #tpu.memory_space<vmem>>, vector<32x128xf32>,
    return
  }
  func.func @transform_0(%arg0: i32) -> (i32, i32) {
    %c0_i32 = arith.constant 0 : i32
    %c0_i32_0 = arith.constant 0 : i32
    return %arg0, %c0_i32 : i32, i32
  }
  func.func @transform_1(%arg0: i32) -> (i32, i32) {
    %c0_i32 = arith.constant 0 : i32
    %c0_i32_0 = arith.constant 0 : i32
    %c0_i32_1 = arith.constant 0 : i32
    return %c0_i32, %c0_i32_0 : i32, i32
  }
  func.func @transform_2(%arg0: i32) -> (i32, i32) {
    %c0_i32 = arith.constant 0 : i32
    %c0_i32_0 = arith.constant 0 : i32
    %c0_i32_1 = arith.constant 0 : i32
    return %c0_i32, %c0_i32_0 : i32, i32
  }
  func.func @transform_3(%arg0: i32) -> (i32, i32) {
    %c0_i32 = arith.constant 0 : i32
    %c0_i32_0 = arith.constant 0 : i32
    %c0_i32_1 = arith.constant 0 : i32
    return %c0_i32, %c0_i32_0 : i32, i32
  }
  func.func @transform_4(%arg0: i32) -> (i32, i32) {
    %c0_i32 = arith.constant 0 : i32
    %c0_i32_0 = arith.constant 0 : i32
    %c0_i32_1 = arith.constant 0 : i32
    return %c0_i32, %c0_i32_0 : i32, i32
  }
  func.func @transform_5(%arg0: i32) -> (i32, i32) {
    %c0_i32 = arith.constant 0 : i32
    %c0_i32_0 = arith.constant 0 : i32
    %c0_i32_1 = arith.constant 0 : i32
    return %c0_i32, %c0_i32_0 : i32, i32
  }
  func.func @transform_6(%arg0: i32) -> (i32, i32) {
    %c0_i32 = arith.constant 0 : i32
    %c0_i32_0 = arith.constant 0 : i32
    %c0_i32_1 = arith.constant 0 : i32
    return %c0_i32, %c0_i32_0 : i32, i32
  }
  func.func @transform_7(%arg0: i32) -> (i32, i32) {
    %c0_i32 = arith.constant 0 : i32
    %c0_i32_0 = arith.constant 0 : i32
    return %arg0, %c0_i32 : i32, i32
  }
}

</mosaic_0001>

<bundles_post_ra>
// kernel: ddmd_forward.1
= control target key start
LH: loop header
LB: loop body
LE: loop exit
PB: predicated region body
PF: predicated region fallthrough
CT: control target
= control target key end

     0   :  { %12 = vsyncpa [#allocation3], 0  ;;  %s829_s0 = inlined_call_operand.vmem [shape: f32[32,4], index: 0, kind: input, shape index: {}]   ;;  %s830_s1 = inlined_call_operand.vmem [shape: f32[4,256], index: 1, kind: input, shape index: {}]   ;;  %s831_s2 = inlined_call_operand.vmem [shape: f32[1,256], index: 2, kind: input, shape index: {}]   ;;  %s832_s3 = inlined_call_operand.hbm [shape: f32[128,128], index: 3, kind: input, shape index: {}]   ;;  %s833_s4 = inlined_call_operand.vmem [shape: f32[1,128], index: 4, kind: input, shape index: {}]   ;;  %s834_s5 = inlined_call_operand.hbm [shape: f32[128,128], index: 5, kind: input, shape index: {}]   ;;  %s835_s6 = inlined_call_operand.vmem [shape: f32[1,128], index: 6, kind: input, shape index: {}]   ;;  %s836_s7 = inlined_call_operand.hbm [shape: f32[32,128], index: 7, kind: output, shape index: {}]  }
   0x1   :  { %13 = vsyncpa [#allocation6], 0 }
   0x2   :  { %14 = vsyncpa [#allocation4], 0  ;;  %s710_s24 = smov [#allocation2]   ;;  %s638_s28 = scalar_lea.hbm %s832_s3, 2048 }
   0x3   :  { %s26_s25 = sshll.u32 %s710_s24, 4  ;;  %p639_p0 = scmp.ne.s32.totalorder %s832_s3, %s638_s28  ;;  %s27_s25 = int_to_ptr.vmem [resolvable:$true] %s26_s25 }
   0x4   :  { %p642_p1 = scmp.lt.u32.totalorder %s638_s28, %s832_s3 }
   0x6   :  { %p644_p2 = pnand %p642_p1, %p639_p0 }
   0x8   :  { %647 = shalt.err (!%p644_p2)
}
   0x9   :  { %s648_s10 = scalar_lea.vmem %s27_s25, 2048  ;;  %p653_p4 = scmp.lt.s32.totalorder %s27_s25, %s27_s25 }
   0xa   :  { %p649_p3 = scmp.ne.s32.totalorder %s27_s25, %s648_s10  ;;  %p654_p5 = scmp.lt.s32.totalorder %s648_s10, %s648_s10 }
   0xc   :  { %p655_p6 = por %p654_p5, %p653_p4 }
   0xe   :  { %p656_p7 = pnand %p655_p6, %p649_p3 }
  0x10   :  { %659 = shalt.err (!%p656_p7)
}
  0x11   :  { %s711_s11 = smov 128   ;;  %s712_s12 = smov 8  }
  0x12   :  { %32 = dma.hbm_to_vmem [thread:$0]  %s832_s3, 2048, %s27_s25, [#allocation3], %s711_s11, %s711_s11, %s712_s12  }
  0x13   :  { %s713_s15 = smov [#allocation5]   ;;  %s660_s19 = scalar_lea.hbm %s834_s5, 2048 }
  0x14   :  { %s40_s16 = sshll.u32 %s713_s15, 4  ;;  %p661_p8 = scmp.ne.s32.totalorder %s834_s5, %s660_s19  ;;  %s41_s16 = int_to_ptr.vmem [resolvable:$true] %s40_s16 }
  0x15   :  { %p664_p9 = scmp.lt.u32.totalorder %s660_s19, %s834_s5 }
  0x17   :  { %p666_p10 = pnand %p664_p9, %p661_p8 }
  0x19   :  { %669 = shalt.err (!%p666_p10)
}
  0x1a   :  { %s670_s24 = scalar_lea.vmem %s41_s16, 2048  ;;  %p675_p12 = scmp.lt.s32.totalorder %s41_s16, %s41_s16 }
  0x1b   :  { %p671_p11 = scmp.ne.s32.totalorder %s41_s16, %s670_s24  ;;  %p676_p13 = scmp.lt.s32.totalorder %s670_s24, %s670_s24 }
  0x1d   :  { %p677_p0 = por %p676_p13, %p675_p12 }
  0x1f   :  { %p678_p1 = pnand %p677_p0, %p671_p11 }
  0x21   :  { %681 = shalt.err (!%p678_p1)
}
  0x22   :  { %46 = dma.hbm_to_vmem [thread:$0]  %s834_s5, 2048, %s41_s16, [#allocation6], %s711_s11, %s711_s11, %s712_s12  }
  0x23   :  { %704 = dma.done.wait [#allocation3], 2048  }
  0x24   :  { %705 = vsyncadd [#allocation3], 4294965248 }
  0x25   :  { %706 = dma.done.wait [#allocation6], 2048  }
  0x26   :  { %707 = vsyncadd [#allocation6], 4294965248  ;;  %v714_v0 = vmov 0.0   ;;  %v59_v1 = vld [vmem:[%s830_s1] sm:$0xff]  ;;  %vm87_vm0 = vcmask 1043456   ;;  %vm74_vm1 = vcmask 31744   ;;  %v62_v49 = vlaneseq }
  0x27   :  { %156 = vmatprep.mubr.f32.mxu0 %v714_v0  ;;  %v73_v2 = vcombine.high %v59_v1, %v59_v1  ;;  %v55_v3 = vld [vmem:[%s829_s0] sm:$0xff]  ;;  %v190_v5 = vld [vmem:[#allocation2 + $0x8] sm:$0xff]  ;;  %v191_v6 = vld [vmem:[#allocation2 + $0x10] sm:$0xff]  ;;  %s715_s16 = smov [#allocation7]  }
  0x28   :  { %v189_v4 = vld [vmem:[#allocation2] sm:$0xff]  ;;  %v192_v7 = vld [vmem:[#allocation2 + $0x18] sm:$0xff]  ;;  %v194_v11 = vld [vmem:[#allocation2 + $0x28] sm:$0xff]  ;;  %v63_v50 = vshrl.u32 %v62_v49, 7  ;;  %s430_s17 = sshll.u32 %s715_s16, 4  ;;  %s431_s17 = int_to_ptr.vmem [resolvable:$true] %s430_s17 }
  0x29   :  { %443 = vmatprep.subr.msk.mxu0 %vm87_vm0, %v73_v2  ;;  %v567_v8 = vpack.c.bf16 %v190_v5, %v189_v4  ;;  %v571_v9 = vpack.c.bf16 %v192_v7, %v191_v6  ;;  %v193_v10 = vld [vmem:[#allocation2 + $0x20] sm:$0xff]  ;;  %v56_v12 = vld [vmem:[%s829_s0 + $0x8] sm:$0xff]  ;;  %v195_v14 = vld [vmem:[#allocation2 + $0x30] sm:$0xff]  ;;  %p687_p3 = scmp.lt.s32.totalorder %s431_s17, %s431_s17 }
  0x2a   :  { %444 = vmatpush1.msk.msra.mxu0 %vm87_vm0, %v59_v1  ;;  %v575_v13 = vpack.c.bf16 %v194_v11, %v193_v10  ;;  %v196_v15 = vld [vmem:[#allocation2 + $0x38] sm:$0xff]  ;;  %v57_v16 = vld [vmem:[%s829_s0 + $0x10] sm:$0xff]  ;;  %v197_v18 = vld [vmem:[#allocation2 + $0x40] sm:$0xff]  ;;  %v64_v51 = vsub.s32 0, %v63_v50 }
  0x2b   :  { %445 = vmatmul.mubr.msk.f32.vlgmr.msra.gmra.mrb[0].mxu0 %vm74_vm1, %v55_v3  ;;  %568 = vmatprep.subr.bf16.mxu1 %v567_v8  ;;  %v579_v17 = vpack.c.bf16 %v196_v15, %v195_v14  ;;  %v198_v19 = vld [vmem:[#allocation2 + $0x48] sm:$0xff]  ;;  %v58_v20 = vld [vmem:[%s829_s0 + $0x18] sm:$0xff]  ;;  %v199_v22 = vld [vmem:[#allocation2 + $0x50] sm:$0xff] }
  0x2c   :  { %162 = vmatprep.mubr.f32.mxu0 %v714_v0  ;;  %570 = vmatpush3.bf16.msra.mxu1 %v567_v8  ;;  %v583_v21 = vpack.c.bf16 %v198_v19, %v197_v18  ;;  %v200_v23 = vld [vmem:[#allocation2 + $0x58] sm:$0xff]  ;;  %v201_v25 = vld [vmem:[#allocation2 + $0x60] sm:$0xff]  ;;  %v202_v26 = vld [vmem:[#allocation2 + $0x68] sm:$0xff] }
  0x2d   :  { %572 = vmatprep.subr.bf16.mxu1 %v571_v9  ;;  %v587_v24 = vpack.c.bf16 %v200_v23, %v199_v22  ;;  %v591_v27 = vpack.c.bf16 %v202_v26, %v201_v25  ;;  %v203_v28 = vld [vmem:[#allocation2 + $0x70] sm:$0xff]  ;;  %v204_v29 = vld [vmem:[#allocation2 + $0x78] sm:$0xff]  ;;  %v305_v31 = vld [vmem:[#allocation5] sm:$0xff] }
  0x2e   :  { %v595_v30 = vpack.c.bf16 %v204_v29, %v203_v28  ;;  %v306_v32 = vld [vmem:[#allocation5 + $0x8] sm:$0xff]  ;;  %v307_v33 = vld [vmem:[#allocation5 + $0x10] sm:$0xff]  ;;  %v308_v35 = vld [vmem:[#allocation5 + $0x18] sm:$0xff] }
  0x2f   :  { %446 = vmatmul.mubr.msk.f32.gmra.mrb[2].mxu0 %vm74_vm1, %v56_v12  ;;  %v599_v34 = vpack.c.bf16 %v306_v32, %v305_v31  ;;  %v603_v36 = vpack.c.bf16 %v308_v35, %v307_v33  ;;  %v309_v37 = vld [vmem:[#allocation5 + $0x20] sm:$0xff]  ;;  %v310_v38 = vld [vmem:[#allocation5 + $0x28] sm:$0xff]  ;;  %v311_v40 = vld [vmem:[#allocation5 + $0x30] sm:$0xff]  ;;  %v68_v33 = vsub.s32 1, %v63_v50 }
  0x30   :  { %168 = vmatprep.mubr.f32.mxu0 %v714_v0  ;;  %574 = vmatpush3.bf16.msra.mxu1 %v571_v9  ;;  %v607_v39 = vpack.c.bf16 %v310_v38, %v309_v37  ;;  %v312_v41 = vld [vmem:[#allocation5 + $0x38] sm:$0xff]  ;;  %v313_v43 = vld [vmem:[#allocation5 + $0x40] sm:$0xff]  ;;  %v314_v44 = vld [vmem:[#allocation5 + $0x48] sm:$0xff] }
  0x31   :  { %576 = vmatprep.subr.bf16.mxu1 %v575_v13  ;;  %600 = vmatprep.subr.bf16.mxu0 %v599_v34  ;;  %v611_v42 = vpack.c.bf16 %v312_v41, %v311_v40  ;;  %v615_v45 = vpack.c.bf16 %v314_v44, %v313_v43  ;;  %v315_v46 = vld [vmem:[#allocation5 + $0x50] sm:$0xff]  ;;  %v316_v47 = vld [vmem:[#allocation5 + $0x58] sm:$0xff]  ;;  %v60_v52 = vld [vmem:[%s831_s2] sm:$0x3] }
  0x32   :  { %602 = vmatpush3.bf16.msra.mxu0 %v599_v34  ;;  %v619_v48 = vpack.c.bf16 %v316_v47, %v315_v46  ;;  %v65_v53 = vrot.slane %v60_v52, %v64_v51  ;;  %v317_v10 = vld [vmem:[#allocation5 + $0x60] sm:$0xff]  ;;  %v318_v11 = vld [vmem:[#allocation5 + $0x68] sm:$0xff]  ;;  %v320_v14 = vld [vmem:[#allocation5 + $0x78] sm:$0xff]  ;;  %v69_v34 = vrot.slane %v60_v52, %v68_v33 }
  0x33   :  { %447 = vmatmul.mubr.msk.f32.gmra.mrb[4].mxu0 %vm74_vm1, %v57_v16  ;;  %604 = vmatprep.subr.bf16.mxu0 %v603_v36  ;;  %v623_v12 = vpack.c.bf16 %v318_v11, %v317_v10  ;;  %v449_v16 = vld [vmem:[%s833_s4] ss:$0 sm:$0xff] }
  0x34   :  { %174 = vmatprep.mubr.f32.mxu0 %v714_v0  ;;  %578 = vmatpush3.bf16.msra.mxu1 %v575_v13  ;;  %v319_v13 = vld [vmem:[#allocation5 + $0x70] sm:$0xff]  ;;  %v450_v38 = vld [vmem:[%s835_s6] ss:$0 sm:$0xff]  ;;  %s682_s6 = scalar_lea.vmem %s431_s17, 512 }
  0x35   :  { %580 = vmatprep.subr.bf16.mxu1 %v579_v17  ;;  %v627_v15 = vpack.c.bf16 %v320_v14, %v319_v13  ;;  %p683_p2 = scmp.ne.s32.totalorder %s431_s17, %s682_s6  ;;  %p688_p4 = scmp.lt.s32.totalorder %s682_s6, %s682_s6 }
  0x36   :  { %606 = vmatpush3.bf16.msra.mxu0 %v603_v36 }
  0x37   :  { %448 = vmatmul.mubr.msk.f32.gmra.mrb[6].mxu0 %vm74_vm1, %v58_v20  ;;  %608 = vmatprep.subr.bf16.mxu0 %v607_v39  ;;  %p689_p5 = por %p688_p4, %p687_p3 }
  0x38   :  { %582 = vmatpush3.bf16.msra.mxu1 %v579_v17 }
  0x39   :  { %584 = vmatprep.subr.bf16.mxu1 %v583_v21  ;;  %p690_p6 = pnand %p689_p5, %p683_p2 }
  0x3a   :  { %610 = vmatpush3.bf16.msra.mxu0 %v607_v39 }
  0x3b   :  { %612 = vmatprep.subr.bf16.mxu0 %v611_v42 }
  0x3c   :  { %586 = vmatpush3.bf16.msra.mxu1 %v583_v21 }
  0x3d   :  { %588 = vmatprep.subr.bf16.mxu1 %v587_v24 }
  0x3e   :  { %614 = vmatpush3.bf16.msra.mxu0 %v611_v42 }
  0x3f   :  { %616 = vmatprep.subr.bf16.mxu0 %v615_v45 }
  0x40   :  { %590 = vmatpush3.bf16.msra.mxu1 %v587_v24 }
  0x41   :  { %592 = vmatprep.subr.bf16.mxu1 %v591_v27 }
  0x42   :  { %618 = vmatpush3.bf16.msra.mxu0 %v615_v45 }
  0x43   :  { %620 = vmatprep.subr.bf16.mxu0 %v619_v48 }
  0x44   :  { %594 = vmatpush3.bf16.msra.mxu1 %v591_v27 }
  0x45   :  { %596 = vmatprep.subr.bf16.mxu1 %v595_v30 }
  0x46   :  { %622 = vmatpush3.bf16.msra.mxu0 %v619_v48 }
  0x47   :  { %624 = vmatprep.subr.bf16.mxu0 %v623_v12 }
  0x48   :  { %598 = vmatpush3.bf16.msra.mxu1 %v595_v30 }
  0x4a   :  { %626 = vmatpush3.bf16.msra.mxu0 %v623_v12 }
  0x4b   :  { %628 = vmatprep.subr.bf16.mxu0 %v627_v15 }
  0x4e   :  { %630 = vmatpush3.bf16.msra.mxu0 %v627_v15 }
  0xfe   :  { %v158_v54 = vpop.f32.mrb[0].mxu0 }
  0xff   :  { %v159_v55 = vadd.f32 %v158_v54, %v65_v53  ;;  %v160_v56 = vpop.f32.mrb[1].mxu0 }
 0x100   :  { %v161_v36 = vadd.f32 %v160_v56, %v69_v34 }
 0x101   :  { %v181_v57 = vmax.f32 %v159_v55, 0.0 }
 0x102   :  { %v164_v58 = vpop.f32.mrb[2].mxu0 }
 0x103   :  { %v165_v59 = vadd.f32 %v164_v58, %v65_v53  ;;  %v166_v60 = vpop.f32.mrb[3].mxu0  ;;  %v185_v61 = vmin.f32 %v181_v57, 6.0 }
 0x104   :  { %v167_v35 = vadd.f32 %v166_v60, %v69_v34 }
 0x105   :  { %v182_v62 = vmax.f32 %v165_v59, 0.0  ;;  %523 = vmatprep.mubr.f32.mxu1 %v185_v61 }
 0x106   :  { %v170_v63 = vpop.f32.mrb[4].mxu0 }
 0x107   :  { %v186_v0 = vmin.f32 %v182_v62, 6.0  ;;  %v171_v1 = vadd.f32 %v170_v63, %v65_v53  ;;  %v172_v2 = vpop.f32.mrb[5].mxu0 }
 0x108   :  { %v173_v45 = vadd.f32 %v172_v2, %v69_v34 }
 0x109   :  { %v183_v3 = vmax.f32 %v171_v1, 0.0  ;;  %524 = vmatmul.mubr.f32.vlgmr.msra.gmra.mrb[0].mxu1 %v186_v0 }
 0x10a   :  { %v176_v4 = vpop.f32.mrb[6].mxu0 }
 0x10b   :  { %v187_v5 = vmin.f32 %v183_v3, 6.0  ;;  %v177_v6 = vadd.f32 %v176_v4, %v65_v53  ;;  %v178_v7 = vpop.f32.mrb[7].mxu0 }
 0x10c   :  { %v179_v44 = vadd.f32 %v178_v7, %v69_v34 }
 0x10d   :  { %v184_v8 = vmax.f32 %v177_v6, 0.0  ;;  %526 = vmatprep.mubr.f32.mxu1 %v187_v5 }
 0x10f   :  { %v188_v9 = vmin.f32 %v184_v8, 6.0 }
 0x111   :  { %527 = vmatmul.mubr.f32.gmra.mrb[2].mxu1 %v188_v9 }
 0x1dc   :  { %v525_v17 = vpop.f32.mrb[0].mxu1 }
 0x1dd   :  { %v284_v18 = vadd.f32 %v525_v17, %v449_v16  ;;  %v278_v19 = vpop.f32.mrb[1].mxu1 }
 0x1de   :  { %v279_v20 = vadd.f32 %v449_v16, %v278_v19 }
 0x1df   :  { %v298_v21 = vmax.f32 %v284_v18, 0.0 }
 0x1e0   :  { %v297_v22 = vmax.f32 %v279_v20, 0.0 }
 0x1e1   :  { %v302_v24 = vmin.f32 %v298_v21, 6.0 }
 0x1e2   :  { %v301_v23 = vmin.f32 %v297_v22, 6.0 }
 0x1e4   :  { %v528_v25 = vpop.f32.mrb[2].mxu1  ;;  %561 = vmatprep.mubr.f32.mxu0 %v301_v23 }
 0x1e5   :  { %v294_v26 = vadd.f32 %v528_v25, %v449_v16  ;;  %v288_v27 = vpop.f32.mrb[3].mxu1  ;;  %562 = vmatmul.mubr.f32.vlgmr.msra.gmra.mrb[8].mxu0 %v302_v24 }
 0x1e6   :  { %v289_v28 = vadd.f32 %v449_v16, %v288_v27 }
 0x1e7   :  { %v300_v29 = vmax.f32 %v294_v26, 0.0 }
 0x1e8   :  { %v299_v30 = vmax.f32 %v289_v28, 0.0 }
 0x1e9   :  { %v304_v32 = vmin.f32 %v300_v29, 6.0 }
 0x1ea   :  { %v303_v31 = vmin.f32 %v299_v30, 6.0 }
 0x1ec   :  { %564 = vmatprep.mubr.f32.mxu0 %v303_v31 }
 0x1ed   :  { %565 = vmatmul.mubr.f32.gmra.mrb[10].mxu0 %v304_v32 }
 0x2b8   :  { %v563_v37 = vpop.f32.mrb[8].mxu0 }
 0x2b9   :  { %v407_v39 = vadd.f32 %v563_v37, %v167_v35  ;;  %v387_v40 = vpop.f32.mrb[9].mxu0 }
 0x2ba   :  { %v406_v41 = vadd.f32 %v387_v40, %v161_v36 }
 0x2bb   :  { %v418_v42 = vadd.f32 %v450_v38, %v407_v39 }
 0x2bc   :  { %v417_v43 = vadd.f32 %v450_v38, %v406_v41 }
 0x2bd   :  { %422 = vst [vmem:[#allocation7 + $0x8] sm:$0xff] %v418_v42 }
 0x2be   :  { %421 = vst [vmem:[#allocation7] sm:$0xff] %v417_v43 }
 0x2c0   :  { %v566_v46 = vpop.f32.mrb[10].mxu0 }
 0x2c1   :  { %v409_v47 = vadd.f32 %v566_v46, %v179_v44  ;;  %v397_v48 = vpop.f32.mrb[11].mxu0 }
 0x2c2   :  { %v408_v49 = vadd.f32 %v397_v48, %v173_v45 }
 0x2c3   :  { %v420_v50 = vadd.f32 %v450_v38, %v409_v47 }
 0x2c4   :  { %v419_v51 = vadd.f32 %v450_v38, %v408_v49 }
 0x2c5   :  { %424 = vst [vmem:[#allocation7 + $0x18] sm:$0xff] %v420_v50 }
 0x2c6   :  { %423 = vst [vmem:[#allocation7 + $0x10] sm:$0xff] %v419_v51 }
 0x2c7   :  { %693 = shalt.err (!%p690_p6)
}
 0x2c8   :  { %s694_s20 = scalar_lea.hbm %s836_s7, 512 }
 0x2c9   :  { %p695_p7 = scmp.ne.s32.totalorder %s836_s7, %s694_s20  ;;  %p698_p8 = scmp.lt.u32.totalorder %s694_s20, %s836_s7 }
 0x2cb   :  { %p700_p9 = pnand %p698_p8, %p695_p7 }
 0x2cd   :  { %703 = shalt.err (!%p700_p9)
}
 0x2ce   :  { %436 = dma.vmem_to_hbm [thread:$0]  %s431_s17, 512, %s836_s7, [#allocation4], %s711_s11, %s711_s11, %s712_s12  }
 0x2cf   :  { %708 = dma.done.wait [#allocation4], 512  }
 0x2d0   :  { %709 = vsyncadd [#allocation4], 4294966784 }
 0x2d1   :  { %440 = vsyncpa [#allocation3], 1 }
 0x2d2   :  { %441 = vsyncpa [#allocation6], 1 }
 0x2d3   :  { %442 = vsyncpa [#allocation4], 1 }

</bundles_post_ra>
